<compile_context>
chip_gen: v5e
topology: v5e:2x2
jax: 0.10.0
libtpu: 0.0.40
codegen_flags: <defaults>
</compile_context>

<pallas_src>
import jax
import jax.numpy as jnp
from jax.experimental import pallas as pl
from jax.experimental.pallas import tpu as pltpu


def _pick_block_batch(B, C, HW, hidden, nc, x_itemsize, vmem_budget_bytes):
    """Largest samples-per-step TB whose per-step working set fits the budget.

    Working set per grid step:
      h intermediate (TB*hidden*HW f32) + double-buffered x block
      (2*TB*C*HW*x_itemsize) + double-buffered output (2*TB*nc f32) + weights.

    Prefers TB that is a multiple of 8 (sublane tile for the (TB, NC) output
    block), divides B, and leaves >= 2 grid steps (so dimension_semantics
    ("parallel",) can use both v7x TensorCores).  Falls back to a single
    full-batch block for tiny batches (optimal on 1-TC v5e/v6e anyway).
    """
    weight_bytes = (hidden * C + hidden + hidden * nc + nc) * 4

    def working_set(tb):
        h_bytes = tb * hidden * HW * 4            # f32 conv/ReLU intermediate
        x_bytes = 2 * tb * C * HW * x_itemsize    # double-buffered input block
        o_bytes = 2 * tb * nc * 4                 # double-buffered output block
        return h_bytes + x_bytes + o_bytes + 2 * weight_bytes

    for tb in (256, 128, 64, 32, 16, 8):
        if B % tb == 0 and B // tb >= 2 and working_set(tb) <= vmem_budget_bytes:
            return tb
    return B  # tiny batch: one grid step over the whole batch


def _prob_space_kernel(x_ref, w1t_ref, b1_ref, w2_ref, b2_ref, out_ref):
    # x_ref  : (TB, C, HW)     TB samples, channel-major (pure reshape of NCHW)
    # w1t_ref: (HIDDEN, C)     1x1-conv weight, transposed (compute dtype)
    # b1_ref : (HIDDEN, 1)     1x1-conv bias, f32
    # w2_ref : (HIDDEN, NC)    classifier weight (compute dtype), row-major head
    # b2_ref : (1, NC)         classifier bias, f32
    # out_ref: (TB, NC)        probabilities, f32, classes on the lane axis
    tb, C, HW = x_ref.shape
    hidden = w1t_ref.shape[0]

    x = x_ref[...]                                            # (TB, C, HW)

    if C < 32:
        # Tiny channel count (synthetic head / RGB stem): the MXU would fill
        # only C/256 of its contraction and still pay full push/drain latency,
        # so do the 1x1 conv as C VPU FMAs over the lane-dense (TB, HW) axes.
        xf = x.astype(jnp.float32)
        w1f = w1t_ref[...].astype(jnp.float32)                # (HIDDEN, C), tiny
        h = None
        for c in range(C):                                    # static unroll, C small
            term = xf[:, c:c + 1, :] * w1f[:, c:c + 1][None]  # (TB,1,HW)*(1,H,1)
            h = term if h is None else h + term               # (TB, HIDDEN, HW) f32
    else:
        # Real backbone channel counts: one batched MXU matmul
        # (TB, HIDDEN, C) @ (TB, C, HW) -> (TB, HIDDEN, HW), f32 accumulation.
        w1b = jnp.broadcast_to(w1t_ref[...][None], (tb, hidden, C))
        h = jnp.einsum("bkc,bcl->bkl", w1b, x,
                       preferred_element_type=jnp.float32)

    # Bias + ReLU in f32.
    h = jnp.maximum(h + b1_ref[...][None], 0.0)               # (TB, HIDDEN, HW)

    # Global average pool: XLU lane reduce over HW (no pool matrix, no MXU pass).
    pooled = jnp.sum(h, axis=-1) * (1.0 / HW)                 # (TB, HIDDEN) f32

    # Classifier head, row-major so NC lands on the lane axis.
    logits = jnp.dot(pooled.astype(w2_ref.dtype), w2_ref[...],
                     preferred_element_type=jnp.float32) + b2_ref[...]   # (TB, NC)

    # Numerically stable softmax over classes (lane reduces + EXACT division;
    # the approximate EUP reciprocal is not accurate enough for sum==1 checks).
    m = jnp.max(logits, axis=-1, keepdims=True)
    e = jnp.exp(logits - m)
    probs = e / jnp.sum(e, axis=-1, keepdims=True)            # (TB, NC) f32

    out_ref[...] = probs.astype(out_ref.dtype)


def prob_space_model(x_nchw, w1, b1, w2, b2, *,
                     compute_dtype=jnp.float32,
                     vmem_budget_bytes=32 * 1024 * 1024):
    """x_nchw: [B, C, H, W] -> probabilities [B, num_classes] (f32).

    compute_dtype: dtype of x / matmul weights fed to the kernel (bf16 is the
    production choice on v6e/v7x; accumulation and softmax stay f32).
    vmem_budget_bytes: per-step working-set budget (32 MiB is safe on v7x's
    64 MiB VMEM; raise toward ~96 MiB on v5e/v6e for bigger blocks).
    """
    B, C, H, W = x_nchw.shape
    HW = H * W
    hidden = w1.shape[1]
    nc = w2.shape[1]
    x_itemsize = jnp.dtype(compute_dtype).itemsize

    # Pure view of NCHW (no HBM transpose); HW stays on the TPU lane axis.
    x3 = x_nchw.reshape(B, C, HW).astype(compute_dtype)

    # Tiny one-time weight re-orientations / casts (outside the hot path).
    w1t = jnp.transpose(w1).astype(compute_dtype)   # (hidden, C)
    b1c = b1.reshape(hidden, 1).astype(jnp.float32)
    w2c = w2.astype(compute_dtype)                  # (hidden, nc) -- row-major head
    b2r = b2.reshape(1, nc).astype(jnp.float32)

    tb = _pick_block_batch(B, C, HW, hidden, nc, x_itemsize, vmem_budget_bytes)
    g = B // tb

    # Advisory cost for XLA scheduling around the call (conv + pool + head).
    cost = pl.CostEstimate(
        flops=2 * B * HW * C * hidden + B * hidden * HW + 2 * B * hidden * nc,
        transcendentals=B * nc,
        bytes_accessed=(B * C * HW * x_itemsize
                        + (hidden * C + hidden * nc) * x_itemsize
                        + (hidden + nc) * 4
                        + B * nc * 4),
    )

    # Raise the scoped-VMEM limit only when the working set actually needs it
    # (16 MiB is the smallest default scoped limit across generations); cap at
    # 64 MiB so the request is valid on v7x as well.
    ws = (tb * hidden * HW * 4 + 2 * tb * C * HW * x_itemsize + 2 * tb * nc * 4
          + 2 * (hidden * C + hidden + hidden * nc + nc) * 4)
    cp_kwargs = dict(dimension_semantics=("parallel",))
    if ws > 16 * 1024 * 1024:
        cp_kwargs["vmem_limit_bytes"] = min(2 * ws, 64 * 1024 * 1024)

    # NOTE: if the x DMA is still exposed on long grids, the x BlockSpec can be
    # deepened with pipeline_mode=pl.Buffered(3); not needed at these sizes.
    out = pl.pallas_call(
        _prob_space_kernel,
        out_shape=jax.ShapeDtypeStruct((B, nc), jnp.float32),
        grid_spec=pltpu.PrefetchScalarGridSpec(
            num_scalar_prefetch=0,
            grid=(g,),
            in_specs=[
                pl.BlockSpec((tb, C, HW), lambda i: (i, 0, 0)),
                pl.BlockSpec((hidden, C), lambda i: (0, 0)),
                pl.BlockSpec((hidden, 1), lambda i: (0, 0)),
                pl.BlockSpec((hidden, nc), lambda i: (0, 0)),
                pl.BlockSpec((1, nc), lambda i: (0, 0)),
            ],
            out_specs=pl.BlockSpec((tb, nc), lambda i: (i, 0)),
        ),
        compiler_params=pltpu.CompilerParams(**cp_kwargs),
        cost_estimate=cost,
    )(x3, w1t, b1c, w2c, b2r)

    return out


def _reference(x_nchw, w1, b1, w2, b2):
    B, C, H, W = x_nchw.shape
    x = jnp.transpose(x_nchw.reshape(B, C, H * W), (0, 2, 1))        # [B, HW, C]
    h = jnp.maximum(jnp.einsum("bpc,ch->bph", x, w1) + b1, 0.0)      # [B, HW, hidden]
    pooled = jnp.mean(h, axis=1)                                     # [B, hidden]
    logits = pooled @ w2 + b2                                        # [B, NC]
    return jax.nn.softmax(logits, axis=1)


if __name__ == "__main__":
    B, C, H, W = 2, 4, 16, 16
    HIDDEN, NUM_CLASSES = 32, 10

    key = jax.random.PRNGKey(0)
    kx, k1, k2, k3, k4 = jax.random.split(key, 5)

    x = jax.random.normal(kx, (B, C, H, W), dtype=jnp.float32)
    w1 = jax.random.normal(k1, (C, HIDDEN), dtype=jnp.float32) * 0.1
    b1 = jax.random.normal(k2, (HIDDEN,), dtype=jnp.float32) * 0.01
    w2 = jax.random.normal(k3, (HIDDEN, NUM_CLASSES), dtype=jnp.float32) * 0.1
    b2 = jax.random.normal(k4, (NUM_CLASSES,), dtype=jnp.float32) * 0.01

    ref = _reference(x, w1, b1, w2, b2)

    # f32 path: tight correctness check against the pure-JAX reference.
    probs = prob_space_model(x, w1, b1, w2, b2, compute_dtype=jnp.float32)
    jax.block_until_ready(probs)
    assert probs.shape == (B, NUM_CLASSES)
    assert jnp.allclose(jnp.sum(probs, axis=1), 1.0, atol=1e-4)
    assert jnp.allclose(probs, ref, atol=1e-4, rtol=1e-4)

    # bf16 path: production MXU/DMA dtype on v6e/v7x (f32 accumulation +
    # f32 softmax inside the kernel), so tolerance is relaxed accordingly.
    probs_bf16 = prob_space_model(x, w1, b1, w2, b2, compute_dtype=jnp.bfloat16)
    jax.block_until_ready(probs_bf16)
    assert probs_bf16.shape == (B, NUM_CLASSES)
    assert jnp.allclose(jnp.sum(probs_bf16, axis=1), 1.0, atol=1e-4)
    assert jnp.allclose(probs_bf16, ref, atol=1e-2, rtol=1e-2)

    print("KERNEL_OK")
</pallas_src>

<mosaic_0001>
module attributes {stable_mosaic.version = 11 : i64} {
  func.func @_prob_space_kernel(%arg0: i32, %arg1: memref<2x4x256xf32, #tpu.memory_space<vmem>>, %arg2: memref<32x4xf32, #tpu.memory_space<vmem>>, %arg3: memref<32x1xf32, #tpu.memory_space<vmem>>, %arg4: memref<32x10xf32, #tpu.memory_space<vmem>>, %arg5: memref<1x10xf32, #tpu.memory_space<vmem>>, %arg6: memref<2x10xf32, #tpu.memory_space<vmem>>) attributes {dimension_semantics = [#tpu.dimension_semantics<parallel>], iteration_bounds = array<i64: 1>, scalar_prefetch = 0 : i64, scratch_operands = 0 : i64, tpu.core_type = #tpu.core_type<tc>, window_params = [{transform_indices = @transform_0, window_bounds = array<i64: 2, 4, 256>}, {pipeline_mode = #tpu.pipeline_mode<synchronous>, transform_indices = @transform_1, window_bounds = array<i64: 32, 4>}, {pipeline_mode = #tpu.pipeline_mode<synchronous>, transform_indices = @transform_2, window_bounds = array<i64: 32, 1>}, {pipeline_mode = #tpu.pipeline_mode<synchronous>, transform_indices = @transform_3, window_bounds = array<i64: 32, 10>}, {pipeline_mode = #tpu.pipeline_mode<synchronous>, transform_indices = @transform_4, window_bounds = array<i64: 1, 10>}, {transform_indices = @transform_5, window_bounds = array<i64: 2, 10>}]} {
    %c0 = arith.constant 0 : index
    %c0_0 = arith.constant 0 : index
    %c0_1 = arith.constant 0 : index
    %0 = vector.load %arg1[%c0, %c0_0, %c0_1] : memref<2x4x256xf32, #tpu.memory_space<vmem>>, vector<2x4x256xf32>
    %c0_2 = arith.constant 0 : index
    %c0_3 = arith.constant 0 : index
    %1 = vector.load %arg2[%c0_2, %c0_3] : memref<32x4xf32, #tpu.memory_space<vmem>>, vector<32x4xf32>
    %2 = vector.extract_strided_slice %0 {offsets = [0, 0, 0], sizes = [2, 1, 256], strides = [1, 1, 1]} : vector<2x4x256xf32> to vector<2x1x256xf32>
    %3 = vector.extract_strided_slice %1 {offsets = [0, 0], sizes = [32, 1], strides = [1, 1]} : vector<32x4xf32> to vector<32x1xf32>
    %4 = vector.shape_cast %3 : vector<32x1xf32> to vector<1x32x1xf32>
    %5 = vector.broadcast %2 : vector<2x1x256xf32> to vector<2x32x256xf32>
    %6 = vector.broadcast %4 : vector<1x32x1xf32> to vector<2x32x256xf32>
    %7 = arith.mulf %5, %6 : vector<2x32x256xf32>
    %8 = vector.extract_strided_slice %0 {offsets = [0, 1, 0], sizes = [2, 1, 256], strides = [1, 1, 1]} : vector<2x4x256xf32> to vector<2x1x256xf32>
    %9 = vector.extract_strided_slice %1 {offsets = [0, 1], sizes = [32, 1], strides = [1, 1]} : vector<32x4xf32> to vector<32x1xf32>
    %10 = vector.shape_cast %9 : vector<32x1xf32> to vector<1x32x1xf32>
    %11 = vector.broadcast %8 : vector<2x1x256xf32> to vector<2x32x256xf32>
    %12 = vector.broadcast %10 : vector<1x32x1xf32> to vector<2x32x256xf32>
    %13 = arith.mulf %11, %12 : vector<2x32x256xf32>
    %14 = arith.addf %7, %13 : vector<2x32x256xf32>
    %15 = vector.extract_strided_slice %0 {offsets = [0, 2, 0], sizes = [2, 1, 256], strides = [1, 1, 1]} : vector<2x4x256xf32> to vector<2x1x256xf32>
    %16 = vector.extract_strided_slice %1 {offsets = [0, 2], sizes = [32, 1], strides = [1, 1]} : vector<32x4xf32> to vector<32x1xf32>
    %17 = vector.shape_cast %16 : vector<32x1xf32> to vector<1x32x1xf32>
    %18 = vector.broadcast %15 : vector<2x1x256xf32> to vector<2x32x256xf32>
    %19 = vector.broadcast %17 : vector<1x32x1xf32> to vector<2x32x256xf32>
    %20 = arith.mulf %18, %19 : vector<2x32x256xf32>
    %21 = arith.addf %14, %20 : vector<2x32x256xf32>
    %22 = vector.extract_strided_slice %0 {offsets = [0, 3, 0], sizes = [2, 1, 256], strides = [1, 1, 1]} : vector<2x4x256xf32> to vector<2x1x256xf32>
    %23 = vector.extract_strided_slice %1 {offsets = [0, 3], sizes = [32, 1], strides = [1, 1]} : vector<32x4xf32> to vector<32x1xf32>
    %24 = vector.shape_cast %23 : vector<32x1xf32> to vector<1x32x1xf32>
    %25 = vector.broadcast %22 : vector<2x1x256xf32> to vector<2x32x256xf32>
    %26 = vector.broadcast %24 : vector<1x32x1xf32> to vector<2x32x256xf32>
    %27 = arith.mulf %25, %26 : vector<2x32x256xf32>
    %28 = arith.addf %21, %27 : vector<2x32x256xf32>
    %c0_4 = arith.constant 0 : index
    %c0_5 = arith.constant 0 : index
    %29 = vector.load %arg3[%c0_4, %c0_5] : memref<32x1xf32, #tpu.memory_space<vmem>>, vector<32x1xf32>
    %30 = vector.shape_cast %29 : vector<32x1xf32> to vector<1x32x1xf32>
    %31 = vector.broadcast %30 : vector<1x32x1xf32> to vector<2x32x256xf32>
    %32 = arith.addf %28, %31 : vector<2x32x256xf32>
    %cst = arith.constant 0.000000e+00 : f32
    %33 = vector.broadcast %cst : f32 to vector<2x32x256xf32>
    %34 = arith.maximumf %32, %33 : vector<2x32x256xf32>
    %cst_6 = arith.constant dense<0.000000e+00> : vector<2x32xf32>
    %35 = vector.multi_reduction <add>, %34, %cst_6 [2] : vector<2x32x256xf32> to vector<2x32xf32>
    %cst_7 = arith.constant 3.906250e-03 : f32
    %36 = vector.broadcast %cst_7 : f32 to vector<2x32xf32>
    %37 = arith.mulf %35, %36 : vector<2x32xf32>
    %c0_8 = arith.constant 0 : index
    %c0_9 = arith.constant 0 : index
    %38 = vector.load %arg4[%c0_8, %c0_9] : memref<32x10xf32, #tpu.memory_space<vmem>>, vector<32x10xf32>
    %cst_10 = arith.constant dense<0.000000e+00> : vector<2x10xf32>
    %39 = tpu.matmul %37, %38, %cst_10 {dimension_numbers = #tpu.dot_dimension_numbers<[1], [0], [0], [1], [0, 0, 1, 1], [], []>} : vector<2x32xf32>, vector<32x10xf32>, vector<2x10xf32> -> vector<2x10xf32>
    %c0_11 = arith.constant 0 : index
    %c0_12 = arith.constant 0 : index
    %40 = vector.load %arg5[%c0_11, %c0_12] : memref<1x10xf32, #tpu.memory_space<vmem>>, vector<1x10xf32>
    %41 = vector.broadcast %40 : vector<1x10xf32> to vector<2x10xf32>
    %42 = arith.addf %39, %41 : vector<2x10xf32>
    %cst_13 = arith.constant dense<0xFF800000> : vector<2xf32>
    %43 = vector.multi_reduction <maximumf>, %42, %cst_13 [1] : vector<2x10xf32> to vector<2xf32>
    %44 = vector.shape_cast %43 : vector<2xf32> to vector<2x1xf32>
    %45 = vector.broadcast %44 : vector<2x1xf32> to vector<2x10xf32>
    %46 = arith.subf %42, %45 : vector<2x10xf32>
    %47 = math.exp %46 : vector<2x10xf32>
    %cst_14 = arith.constant dense<0.000000e+00> : vector<2xf32>
    %48 = vector.multi_reduction <add>, %47, %cst_14 [1] : vector<2x10xf32> to vector<2xf32>
    %49 = vector.shape_cast %48 : vector<2xf32> to vector<2x1xf32>
    %50 = vector.broadcast %49 : vector<2x1xf32> to vector<2x10xf32>
    %51 = arith.divf %47, %50 : vector<2x10xf32>
    %c0_15 = arith.constant 0 : index
    %c0_16 = arith.constant 0 : index
    %52 = vector.load %arg6[%c0_15, %c0_16] : memref<2x10xf32, #tpu.memory_space<vmem>>, vector<2x10xf32>
    tpu.vector_store %arg6[%c0_15, %c0_16], %51 {strides = array<i32>} : memref<2x10xf32, #tpu.memory_space<vmem>>, vector<2x10xf32>,
    return
  }
  func.func @transform_0(%arg0: i32) -> (i32, i32, i32) {
    %c0_i32 = arith.constant 0 : i32
    %c0_i32_0 = arith.constant 0 : i32
    %c0_i32_1 = arith.constant 0 : i32
    return %arg0, %c0_i32, %c0_i32_0 : i32, i32, i32
  }
  func.func @transform_1(%arg0: i32) -> (i32, i32) {
    %c0_i32 = arith.constant 0 : i32
    %c0_i32_0 = arith.constant 0 : i32
    %c0_i32_1 = arith.constant 0 : i32
    return %c0_i32, %c0_i32_0 : i32, i32
  }
  func.func @transform_2(%arg0: i32) -> (i32, i32) {
    %c0_i32 = arith.constant 0 : i32
    %c0_i32_0 = arith.constant 0 : i32
    %c0_i32_1 = arith.constant 0 : i32
    return %c0_i32, %c0_i32_0 : i32, i32
  }
  func.func @transform_3(%arg0: i32) -> (i32, i32) {
    %c0_i32 = arith.constant 0 : i32
    %c0_i32_0 = arith.constant 0 : i32
    %c0_i32_1 = arith.constant 0 : i32
    return %c0_i32, %c0_i32_0 : i32, i32
  }
  func.func @transform_4(%arg0: i32) -> (i32, i32) {
    %c0_i32 = arith.constant 0 : i32
    %c0_i32_0 = arith.constant 0 : i32
    %c0_i32_1 = arith.constant 0 : i32
    return %c0_i32, %c0_i32_0 : i32, i32
  }
  func.func @transform_5(%arg0: i32) -> (i32, i32) {
    %c0_i32 = arith.constant 0 : i32
    %c0_i32_0 = arith.constant 0 : i32
    return %arg0, %c0_i32 : i32, i32
  }
}

</mosaic_0001>

<bundles_post_ra>
// kernel: tpu_custom_call.1
= control target key start
LH: loop header
LB: loop body
LE: loop exit
PB: predicated region body
PF: predicated region fallthrough
CT: control target
= control target key end

     0   :  { %v499_v2 = vmov 2   ;;  %v500_v3 = vmov 1   ;;  %s737_s0 = inlined_call_operand.vmem [shape: f32[2,4,256], index: 0, kind: input, shape index: {}]   ;;  %s738_s1 = inlined_call_operand.vmem [shape: f32[32,4], index: 1, kind: input, shape index: {}]   ;;  %s739_s2 = inlined_call_operand.vmem [shape: f32[32,1], index: 2, kind: input, shape index: {}]   ;;  %s740_s3 = inlined_call_operand.vmem [shape: f32[32,10], index: 3, kind: input, shape index: {}]   ;;  %s741_s4 = inlined_call_operand.vmem [shape: f32[1,10], index: 4, kind: input, shape index: {}]   ;;  %s742_s5 = inlined_call_operand.hbm [shape: f32[2,10], index: 5, kind: output, shape index: {}]  }
   0x1   :  { %v24_v0 = vld [vmem:[%s738_s1 + $0x8] sm:$0xff]  ;;  %v23_v1 = vld [vmem:[%s738_s1] sm:$0xff]  ;;  %460 = vset.pattern.permute.xlu0 %v499_v2  ;;  %456 = vset.pattern.permute.xlu1 %v500_v3  ;;  %v25_v4 = vld [vmem:[%s738_s1 + $0x10] sm:$0xff] }
   0x2   :  { %10 = vsyncpa [#allocation3], 0  ;;  %154 = vperm.xlu0 %460, %v24_v0   ;;  %90 = vperm.xlu1 %456, %v23_v1   ;;  %v501_v5 = vmov 0   ;;  %v502_v6 = vmov 3   ;;  %v26_v7 = vld [vmem:[%s738_s1 + $0x18] sm:$0xff]  ;;  %v257_v9 = vld [vmem:[%s739_s2] sm:$0xff] }
   0x3   :  { %457 = vset.pattern.permute.xlu2 %v501_v5  ;;  %v260_v8 = vld [vmem:[%s739_s2 + $0x18] sm:$0xff]  ;;  %v258_v10 = vld [vmem:[%s739_s2 + $0x8] sm:$0xff]  ;;  %v259_v11 = vld [vmem:[%s739_s2 + $0x10] sm:$0xff]  ;;  %vm366_vm0 = vcmask 130112   ;;  %vm370_vm1 = vcmask 195712   ;;  %vm374_vm2 = vcmask 261312  }
   0x4   :  { %53 = vperm.xlu2 %457, %v25_v4   ;;  %v21_v20 = vld [vmem:[%s737_s0] sm:$0xff]  ;;  %v22_v21 = vld [vmem:[%s737_s0 + $0x8] sm:$0xff]  ;;  %vm383_vm3 = vcmask 1041409   ;;  %vm385_vm4 = vcmask 261120   ;;  %vm408_vm5 = vcmask 74752   ;;  %s441_s22 = sshll.u32 %s742_s5, 4  ;;  %s442_s22 = int_to_ptr.hbm [resolvable:$true] %s441_s22 }
   0x5   :  { %v29_v22 = vperm.slane %v21_v20, 0  ;;  %v30_v23 = vperm.slane %v21_v20, 4  ;;  %v31_v24 = vperm.slane %v22_v21, 0  ;;  %v77_v25 = vperm.slane %v21_v20, 1 }
   0x6   :  { %v32_v27 = vperm.slane %v22_v21, 4  ;;  %v78_v28 = vperm.slane %v21_v20, 5  ;;  %v79_v32 = vperm.slane %v22_v21, 1  ;;  %v80_v34 = vperm.slane %v22_v21, 5 }
   0x7   :  { %v578_v30 = vperm.slane %v29_v22, 0  ;;  %v580_v31 = vperm.slane %v30_v23, 0  ;;  %v582_v33 = vperm.slane %v31_v24, 0  ;;  %v85_v35 = vperm.slane %v77_v25, 1 }
   0x8   :  { %v137_v36 = vperm.slane %v21_v20, 2  ;;  %v138_v38 = vperm.slane %v21_v20, 6  ;;  %v139_v39 = vperm.slane %v22_v21, 2  ;;  %v140_v40 = vperm.slane %v22_v21, 6 }
   0x9   :  { %v197_v41 = vperm.slane %v21_v20, 3  ;;  %v586_v42 = vperm.slane %v32_v27, 0  ;;  %v86_v43 = vperm.slane %v78_v28, 1  ;;  %v198_v44 = vperm.slane %v21_v20, 7 }
   0xa   :  { %464 = vset.pattern.permute.xlu0 %v502_v6  ;;  %94 = vperm.xlu1 %456, %v24_v0   ;;  %v199_v45 = vperm.slane %v22_v21, 3  ;;  %v590_v47 = vperm.slane %v79_v32, 1  ;;  %v200_v49 = vperm.slane %v22_v21, 7  ;;  %v595_v51 = vperm.slane %v80_v34, 1 }
   0xb   :  { %218 = vperm.xlu0 %464, %v25_v4   ;;  %v145_v53 = vperm.slane %v137_v36, 2  ;;  %v146_v54 = vperm.slane %v138_v38, 2  ;;  %v598_v55 = vperm.slane %v139_v39, 2  ;;  %v600_v56 = vperm.slane %v140_v40, 2 }
   0xc   :  { %458 = vset.pattern.permute.xlu2 %v500_v3  ;;  %v602_v57 = vperm.slane %v197_v41, 3  ;;  %v606_v59 = vperm.slane %v198_v44, 3  ;;  %v608_v60 = vperm.slane %v199_v45, 3 }
   0xd   :  { %98 = vperm.xlu2 %458, %v25_v4  }
  0x12   :  { %102 = vperm.xlu1 %456, %v26_v7  }
  0x13   :  { %465 = vset.pattern.permute.xlu0 %v501_v5 }
  0x14   :  { %43 = vperm.xlu0 %465, %v23_v1  }
  0x15   :  { %459 = vset.pattern.permute.xlu2 %v499_v2 }
  0x16   :  { %150 = vperm.xlu2 %459, %v23_v1  }
  0x1a   :  { %461 = vset.pattern.permute.xlu1 %v499_v2 }
  0x1b   :  { %158 = vperm.xlu1 %461, %v25_v4  }
  0x1c   :  { %48 = vperm.xlu0 %465, %v24_v0  }
  0x1e   :  { %162 = vperm.xlu2 %459, %v26_v7  }
  0x23   :  { %462 = vset.pattern.permute.xlu1 %v502_v6 }
  0x24   :  { %58 = vperm.xlu0 %465, %v26_v7   ;;  %210 = vperm.xlu1 %462, %v23_v1   ;;  %v612_v1 = vperm.slane %v200_v49, 3 }
  0x26   :  { %463 = vset.pattern.permute.xlu2 %v502_v6 }
  0x27   :  { %214 = vperm.xlu2 %463, %v24_v0  }
  0x2c   :  { %278 = vperm.xlu0 %465, %v260_v8   ;;  %222 = vperm.xlu1 %462, %v26_v7  }
  0x2f   :  { %466 = vset.pattern.permute.xlu2 %v501_v5 }
  0x30   :  { %263 = vperm.xlu2 %466, %v257_v9  }
  0x34   :  { %467 = vset.pattern.permute.xlu1 %v501_v5 }
  0x35   :  { %268 = vperm.xlu1 %467, %v258_v10  }
  0x38   :  { %273 = vperm.xlu2 %466, %v259_v11  }
  0x5e   :  { %v558_v12 = vpop.permute.xlu2 %53 }
  0x5f   :  { %v65_v46 = vmul.f32 %v558_v12, %v578_v30  ;;  %v66_v50 = vmul.f32 %v558_v12, %v580_v31 }
  0x67   :  { %v560_v13 = vpop.permute.xlu2 %98 }
  0x68   :  { %v109_v48 = vmul.f32 %v560_v13, %v85_v35  ;;  %v110_v52 = vmul.f32 %v560_v13, %v86_v43 }
  0x6a   :  { %v125_v0 = vadd.f32 %v109_v48, %v65_v46  ;;  %v126_v4 = vadd.f32 %v110_v52, %v66_v50 }
  0x70   :  { %v151_v14 = vpop.permute.xlu2 %150 }
  0x71   :  { %v165_v5 = vmul.f32 %v151_v14, %v145_v53  ;;  %v166_v8 = vmul.f32 %v151_v14, %v146_v54  ;;  %v173_v9 = vmul.f32 %v151_v14, %v598_v55  ;;  %v174_v20 = vmul.f32 %v151_v14, %v600_v56 }
  0x74   :  { %v91_v15 = vpop.permute.xlu1 %90  ;;  %v562_v16 = vpop.permute.xlu0 %154 }
  0x75   :  { %v113_v6 = vmul.f32 %v91_v15, %v590_v47  ;;  %v114_v7 = vmul.f32 %v91_v15, %v595_v51  ;;  %v105_v10 = vmul.f32 %v91_v15, %v85_v35  ;;  %v106_v11 = vmul.f32 %v91_v15, %v86_v43 }
  0x76   :  { %v621_v21 = vmul.f32 %v562_v16, %v145_v53  ;;  %v626_v32 = vmul.f32 %v562_v16, %v146_v54 }
  0x78   :  { %v568_v19 = vpop.permute.xlu2 %162 }
  0x79   :  { %v171_v34 = vmul.f32 %v568_v19, %v145_v53  ;;  %v172_v15 = vmul.f32 %v568_v19, %v146_v54 }
  0x7c   :  { %v564_v17 = vpop.permute.xlu1 %94 }
  0x7d   :  { %v566_v18 = vpop.permute.xlu0 %218  ;;  %v107_v14 = vmul.f32 %v564_v17, %v85_v35  ;;  %v108_v36 = vmul.f32 %v564_v17, %v86_v43  ;;  %v115_v38 = vmul.f32 %v564_v17, %v590_v47 }
  0x7e   :  { %v229_v39 = vmul.f32 %v566_v18, %v602_v57  ;;  %v230_v40 = vmul.f32 %v566_v18, %v606_v59 }
  0x81   :  { %v584_v37 = vpop.permute.xlu2 %214 }
  0x84   :  { %v576_v26 = vpop.permute.xlu1 %102 }
  0x85   :  { %v111_v41 = vmul.f32 %v576_v26, %v85_v35  ;;  %v112_v44 = vmul.f32 %v576_v26, %v86_v43 }
  0x86   :  { %v44_v29 = vpop.permute.xlu0 %43 }
  0x87   :  { %v69_v61 = vmul.f32 %v44_v29, %v582_v33  ;;  %v70_v62 = vmul.f32 %v44_v29, %v586_v42  ;;  %v61_v2 = vmul.f32 %v44_v29, %v578_v30  ;;  %v62_v3 = vmul.f32 %v44_v29, %v580_v31 }
  0x89   :  { %v129_v22 = vadd.f32 %v113_v6, %v69_v61  ;;  %v130_v23 = vadd.f32 %v114_v7, %v70_v62  ;;  %v121_v25 = vadd.f32 %v105_v10, %v61_v2  ;;  %v122_v27 = vadd.f32 %v106_v11, %v62_v3 }
  0x8a   :  { %v264_v24 = vpop.permute.xlu2 %263 }
  0x8b   :  { %v189_v48 = vadd.f32 %v173_v9, %v129_v22  ;;  %v190_v49 = vadd.f32 %v174_v20, %v130_v23 }
  0x8d   :  { %v604_v58 = vpop.permute.xlu1 %158 }
  0x8e   :  { %v49_v63 = vpop.permute.xlu0 %48  ;;  %v169_v28 = vmul.f32 %v604_v58, %v145_v53  ;;  %v170_v29 = vmul.f32 %v604_v58, %v146_v54  ;;  %v181_v53 = vadd.f32 %v165_v5, %v121_v25  ;;  %v182_v54 = vadd.f32 %v166_v8, %v122_v27 }
  0x8f   :  { %v63_v35 = vmul.f32 %v49_v63, %v578_v30  ;;  %v64_v43 = vmul.f32 %v49_v63, %v580_v31  ;;  %v71_v9 = vmul.f32 %v49_v63, %v582_v33  ;;  %v72_v10 = vmul.f32 %v49_v63, %v586_v42 }
  0x90   :  { %v185_v50 = vadd.f32 %v169_v28, %v125_v0  ;;  %v186_v52 = vadd.f32 %v170_v29, %v126_v4  ;;  %v116_v63 = vmul.f32 %v564_v17, %v595_v51 }
  0x91   :  { %v124_v29 = vadd.f32 %v108_v36, %v64_v43  ;;  %v74_v43 = vmul.f32 %v558_v12, %v586_v42 }
  0x92   :  { %v245_v11 = vadd.f32 %v229_v39, %v185_v50  ;;  %v246_v20 = vadd.f32 %v230_v40, %v186_v52  ;;  %v654_v22 = vpop.permute.xlu2 %273  ;;  %v227_v39 = vmul.f32 %v584_v37, %v602_v57  ;;  %v228_v50 = vmul.f32 %v584_v37, %v606_v59 }
  0x93   :  { %v131_v52 = vadd.f32 %v115_v38, %v71_v9  ;;  %v132_v17 = vadd.f32 %v116_v63, %v72_v10  ;;  %v177_v10 = vmul.f32 %v604_v58, %v598_v55 }
  0x96   :  { %v640_v45 = vpop.permute.xlu0 %58  ;;  %v211_v46 = vpop.permute.xlu1 %210 }
  0x97   :  { %v225_v61 = vmul.f32 %v211_v46, %v602_v57  ;;  %v226_v62 = vmul.f32 %v211_v46, %v606_v59  ;;  %v233_v2 = vmul.f32 %v211_v46, %v608_v60  ;;  %v234_v3 = vmul.f32 %v211_v46, %v612_v1 }
  0x98   :  { %v67_v6 = vmul.f32 %v640_v45, %v578_v30  ;;  %v68_v0 = vmul.f32 %v640_v45, %v580_v31  ;;  %v123_v30 = vadd.f32 %v107_v14, %v63_v35  ;;  %v73_v35 = vmul.f32 %v558_v12, %v582_v33 }
  0x99   :  { %v249_v4 = vadd.f32 %v233_v2, %v189_v48  ;;  %v250_v5 = vadd.f32 %v234_v3, %v190_v49  ;;  %v241_v7 = vadd.f32 %v225_v61, %v181_v53  ;;  %v242_v8 = vadd.f32 %v226_v62, %v182_v54 }
  0x9a   :  { %v127_v46 = vadd.f32 %v111_v41, %v67_v6  ;;  %v128_v31 = vadd.f32 %v112_v44, %v68_v0  ;;  %v286_v44 = vadd.f32 %v654_v22, %v246_v20  ;;  %v183_v2 = vadd.f32 %v621_v21, %v123_v30 }
  0x9b   :  { %v289_v23 = vadd.f32 %v264_v24, %v249_v4  ;;  %v290_v25 = vadd.f32 %v264_v24, %v250_v5  ;;  %v281_v27 = vadd.f32 %v264_v24, %v241_v7  ;;  %v282_v28 = vadd.f32 %v264_v24, %v242_v8 }
  0x9c   :  { %v285_v24 = vadd.f32 %v654_v22, %v245_v11  ;;  %v187_v62 = vadd.f32 %v171_v34, %v127_v46  ;;  %v188_v3 = vadd.f32 %v172_v15, %v128_v31  ;;  %v175_v6 = vmul.f32 %v562_v16, %v598_v55 }
  0x9d   :  { %v305_v49 = vmax.f32 %v289_v23, 0.0  ;;  %v306_v53 = vmax.f32 %v290_v25, 0.0  ;;  %v297_v54 = vmax.f32 %v281_v27, 0.0  ;;  %v298_v61 = vmax.f32 %v282_v28, 0.0 }
  0x9e   :  { %v656_v48 = vpop.permute.xlu1 %222  ;;  %v176_v34 = vmul.f32 %v562_v16, %v600_v56  ;;  %v301_v38 = vmax.f32 %v285_v24, 0.0  ;;  %v302_v0 = vmax.f32 %v286_v44, 0.0  ;;  %v117_v21 = vmul.f32 %v560_v13, %v590_v47  ;;  %v279_v5 = vpop.permute.xlu0 %278 }
  0x9f   :  { %v231_v40 = vmul.f32 %v656_v48, %v602_v57  ;;  %v232_v14 = vmul.f32 %v656_v48, %v606_v59  ;;  %v325_v36 = vadd.f32 %v306_v53, %v305_v49  ;;  %v313_v41 = vadd.f32 %v298_v61, %v297_v54 }
  0xa0   :  { %v184_v57 = vadd.f32 %v626_v32, %v124_v29  ;;  %v118_v32 = vmul.f32 %v560_v13, %v595_v51  ;;  %v235_v15 = vmul.f32 %v584_v37, %v608_v60  ;;  %v236_v12 = vmul.f32 %v584_v37, %v612_v1 }
  0xa1   :  { %326 = vadd.xlane.f32.xlu0 %v325_v36  ;;  %314 = vadd.xlane.f32.xlu1 %v313_v41  ;;  %v247_v59 = vadd.f32 %v231_v40, %v187_v62  ;;  %v248_v4 = vadd.f32 %v232_v14, %v188_v3  ;;  %v243_v7 = vadd.f32 %v227_v39, %v183_v2 }
  0xa2   :  { %v244_v8 = vadd.f32 %v228_v50, %v184_v57  ;;  %v191_v9 = vadd.f32 %v175_v6, %v131_v52  ;;  %v192_v16 = vadd.f32 %v176_v34, %v132_v17  ;;  %v178_v11 = vmul.f32 %v604_v58, %v600_v56 }
  0xa3   :  { %v287_v23 = vadd.f32 %v279_v5, %v247_v59  ;;  %v319_v13 = vadd.f32 %v302_v0, %v301_v38  ;;  %v288_v28 = vadd.f32 %v279_v5, %v248_v4  ;;  %v133_v30 = vadd.f32 %v117_v21, %v73_v35 }
  0xa4   :  { %v134_v29 = vadd.f32 %v118_v32, %v74_v43  ;;  %v237_v37 = vmul.f32 %v566_v18, %v608_v60  ;;  %v251_v49 = vadd.f32 %v235_v15, %v191_v9  ;;  %v252_v53 = vadd.f32 %v236_v12, %v192_v16  ;;  %v345_v32 = vld [vmem:[%s740_s3] sm:$0xff] }
  0xa5   :  { %v238_v54 = vmul.f32 %v566_v18, %v612_v1  ;;  %v193_v58 = vadd.f32 %v177_v10, %v133_v30  ;;  %v303_v63 = vmax.f32 %v287_v23, 0.0  ;;  %v304_v40 = vmax.f32 %v288_v28, 0.0 }
  0xa6   :  { %v194_v61 = vadd.f32 %v178_v11, %v134_v29  ;;  %v75_v36 = vmul.f32 %v640_v45, %v582_v33  ;;  %v76_v41 = vmul.f32 %v640_v45, %v586_v42  ;;  %v119_v44 = vmul.f32 %v576_v26, %v590_v47 }
  0xa7   :  { %v269_v20 = vpop.permute.xlu1 %268  ;;  %v120_v18 = vmul.f32 %v576_v26, %v595_v51  ;;  %v253_v50 = vadd.f32 %v237_v37, %v193_v58  ;;  %v322_v52 = vadd.f32 %v304_v40, %v303_v63  ;;  %v179_v33 = vmul.f32 %v568_v19, %v598_v55 }
  0xa8   :  { %v283_v25 = vadd.f32 %v269_v20, %v243_v7  ;;  %v284_v27 = vadd.f32 %v269_v20, %v244_v8  ;;  %v291_v24 = vadd.f32 %v269_v20, %v251_v49  ;;  %v292_v14 = vadd.f32 %v269_v20, %v252_v53 }
  0xa9   :  { %320 = vadd.xlane.f32.xlu1 %v319_v13  ;;  %v254_v2 = vadd.f32 %v238_v54, %v194_v61  ;;  %v135_v57 = vadd.f32 %v119_v44, %v75_v36  ;;  %v136_v3 = vadd.f32 %v120_v18, %v76_v41  ;;  %v180_v42 = vmul.f32 %v568_v19, %v600_v56 }
  0xaa   :  { %v299_v46 = vmax.f32 %v283_v25, 0.0  ;;  %v300_v31 = vmax.f32 %v284_v27, 0.0  ;;  %v307_v17 = vmax.f32 %v291_v24, 0.0  ;;  %v308_v62 = vmax.f32 %v292_v14, 0.0 }
  0xab   :  { %v293_v45 = vadd.f32 %v654_v22, %v253_v50  ;;  %v239_v47 = vmul.f32 %v656_v48, %v608_v60  ;;  %v240_v26 = vmul.f32 %v656_v48, %v612_v1  ;;  %v294_v35 = vadd.f32 %v654_v22, %v254_v2  ;;  %v348_v1 = vld [vmem:[%s740_s3 + $0x18] sm:$0xff]  ;;  %v347_v22 = vld [vmem:[%s740_s3 + $0x10] sm:$0xff]  ;;  %v346_v48 = vld [vmem:[%s740_s3 + $0x8] sm:$0xff] }
  0xac   :  { %v316_v39 = vadd.f32 %v300_v31, %v299_v46  ;;  %v328_v51 = vadd.f32 %v308_v62, %v307_v17  ;;  %v195_v43 = vadd.f32 %v179_v33, %v135_v57  ;;  %v196_v6 = vadd.f32 %v180_v42, %v136_v3  ;;  %400 = vmatpush.msra.mxu0 %v348_v1  ;;  %v468_v17 = vld [vmem:[%s741_s4] ss:$0 sm:$0xff]  ;;  %s503_s4 = smov [#allocation2]  }
  0xad   :  { %v309_v59 = vmax.f32 %v293_v45, 0.0  ;;  %v310_v34 = vmax.f32 %v294_v35, 0.0  ;;  %v361_v8 = vlaneseq  ;;  %s439_s19 = sshll.u32 %s503_s4, 4  ;;  %s440_s19 = int_to_ptr.vmem [resolvable:$true] %s439_s19 }
  0xae   :  { %317 = vadd.xlane.f32.xlu2 %v316_v39  ;;  %v255_v55 = vadd.f32 %v239_v47, %v195_v43  ;;  %v256_v38 = vadd.f32 %v240_v26, %v196_v6  ;;  %401 = vmatpush.msra.mxu0 %v347_v22 }
  0xaf   :  { %v331_v0 = vadd.f32 %v310_v34, %v309_v59  ;;  %v362_v9 = vand.u32 127, %v361_v8 }
  0xb0   :  { %v295_v19 = vadd.f32 %v279_v5, %v255_v55  ;;  %v296_v56 = vadd.f32 %v279_v5, %v256_v38  ;;  %402 = vmatpush.msra.mxu0 %v346_v48 }
  0xb1   :  { %323 = vadd.xlane.f32.xlu1 %v322_v52  ;;  %v364_v16 = vadd.s32 4294967288, %v362_v9  ;;  %v368_v28 = vadd.s32 4294967280, %v362_v9  ;;  %v372_v31 = vadd.s32 4294967272, %v362_v9 }
  0xb2   :  { %v311_v4 = vmax.f32 %v295_v19, 0.0  ;;  %v312_v21 = vmax.f32 %v296_v56, 0.0  ;;  %403 = vmatpush.msra.mxu0 %v345_v32 }
  0xb4   :  { %v334_v60 = vadd.f32 %v312_v21, %v311_v4 }
  0xb6   :  { %329 = vadd.xlane.f32.xlu2 %v328_v51 }
  0xbe   :  { %332 = vadd.xlane.f32.xlu2 %v331_v0 }
  0xc6   :  { %335 = vadd.xlane.f32.xlu2 %v334_v60 }
 0x114   :  { %v315_v15 = vpop.xlane.xlu1 %314  ;;  %v327_v23 = vpop.xlane.xlu0 %326 }
 0x115   :  { %v337_v20 = vmul.f32 0.00390625, %v315_v15  ;;  %v341_v37 = vmul.f32 0.00390625, %v327_v23 }
 0x117   :  { %v363_v46 = vperm.slane %v337_v20, %v362_v9  ;;  %v376_v39 = vperm.slane %v341_v37, %v362_v9 }
 0x11c   :  { %v321_v5 = vpop.xlane.xlu1 %320 }
 0x11d   :  { %v339_v30 = vmul.f32 0.00390625, %v321_v5 }
 0x11f   :  { %v369_v58 = vperm.slane %v339_v30, %v368_v28 }
 0x121   :  { %v318_v12 = vpop.xlane.xlu2 %317 }
 0x122   :  { %v338_v10 = vmul.f32 0.00390625, %v318_v12 }
 0x124   :  { %v324_v13 = vpop.xlane.xlu1 %323  ;;  %v365_v25 = vperm.slane %v338_v10, %v364_v16 }
 0x125   :  { %v340_v49 = vmul.f32 0.00390625, %v324_v13 }
 0x126   :  { %v367_v53 = vsel %vm366_vm0, %v365_v25, %v363_v46 }
 0x127   :  { %v373_v40 = vperm.slane %v340_v49, %v372_v31  ;;  %v371_v14 = vsel %vm370_vm1, %v369_v58, %v367_v53 }
 0x129   :  { %v330_v7 = vpop.xlane.xlu2 %329  ;;  %v375_v18 = vsel %vm374_vm2, %v373_v40, %v371_v14 }
 0x12a   :  { %v342_v27 = vmul.f32 0.00390625, %v330_v7 }
 0x12c   :  { %v377_v54 = vperm.slane %v342_v27, %v364_v16 }
 0x12e   :  { %v378_v36 = vsel %vm366_vm0, %v377_v54, %v376_v39 }
 0x131   :  { %v333_v11 = vpop.xlane.xlu2 %332 }
 0x132   :  { %v343_v29 = vmul.f32 0.00390625, %v333_v11 }
 0x134   :  { %v379_v61 = vperm.slane %v343_v29, %v368_v28 }
 0x136   :  { %v380_v44 = vsel %vm370_vm1, %v379_v61, %v378_v36 }
 0x139   :  { %v336_v63 = vpop.xlane.xlu2 %335 }
 0x13a   :  { %v344_v24 = vmul.f32 0.00390625, %v336_v63 }
 0x13c   :  { %v381_v41 = vperm.slane %v344_v24, %v372_v31 }
 0x13e   :  { %v382_v50 = vsel %vm374_vm2, %v381_v41, %v380_v44 }
 0x13f   :  { %v384_v52 = vsel %vm383_vm3, %v382_v50, %v375_v18 }
 0x140   :  { %450 = vmatmul.msk.f32.vlgmr.msra.gmra.mxu0 %vm385_vm4, %v384_v52 }
 0x1bd   :  { %v405_v62 = vpop.f32.mrf.mxu0 }
 0x1be   :  { %v406_v2 = vadd.f32 %v468_v17, %v405_v62 }
 0x1c0   :  { %v409_v57 = vsel %vm408_vm5, %v406_v2, -inf }
 0x1c1   :  { %410 = vmax.xlane.f32.xlu0 %v409_v57 }
 0x234   :  { %v411_v3 = vpop.xlane.xlu0 %410 }
 0x235   :  { %v412_v33 = vsub.f32 %v406_v2, %v411_v3 }
 0x237   :  { %v413_v42 = vmul.f32 1.442695, %v412_v33 }
 0x239   :  { %469 = vpow2.f32 %v413_v42 }
 0x23f   :  { %v470_v45 = vpop.eup %469 }
 0x240   :  { %v415_v47 = vsel %vm408_vm5, %v470_v45, 0.0 }
 0x241   :  { %416 = vadd.xlane.f32.xlu1 %v415_v47 }
 0x2b4   :  { %v417_v26 = vpop.xlane.xlu1 %416 }
 0x2b5   :  { %471 = vrcp.f32 %v417_v26  ;;  %v429_v6 = vand.u32 2147483648, %v417_v26  ;;  %v427_v34 = vand.u32 2147483647, %v417_v26  ;;  %vm423_vm7 = vweird.f32 %v417_v26 }
 0x2b7   :  { %v430_v38 = vor.u32 1.1754944e-38, %v429_v6  ;;  %vm428_vm9 = vcmp.eq.f32.partialorder %v427_v34, 8.507059e+37 }
 0x2bb   :  { %v472_v51 = vpop.eup %471 }
 0x2bc   :  { %v419_v35 = vmul.f32 %v472_v51, %v417_v26  ;;  %vm424_vm6 = vweird.f32 %v472_v51 }
 0x2bd   :  { %vm425_vm8 = vmor %vm423_vm7, %vm424_vm6 }
 0x2be   :  { %v420_v43 = vsub.f32 1.0, %v419_v35 }
 0x2c0   :  { %v421_v59 = vmul.f32 %v472_v51, %v420_v43 }
 0x2c2   :  { %v422_v55 = vadd.f32 %v472_v51, %v421_v59 }
 0x2c4   :  { %v426_v0 = vsel %vm425_vm8, %v472_v51, %v422_v55 }
 0x2c5   :  { %v431_v19 = vsel %vm428_vm9, %v430_v38, %v426_v0 }
 0x2c6   :  { %v432_v56 = vmul.f32 %v470_v45, %v431_v19 }
 0x2c8   :  { %433 = vst.msk [vmem:[#allocation2] sm:$0x3] %vm408_vm5, %v432_v56 }
 0x2c9   :  { %444 = dma.vmem_to_hbm [thread:$0]  %s440_s19, 32, %s442_s22, [#allocation3]  }
 0x2ca   :  { %497 = dma.done.wait [#allocation3], 32  }
 0x2cb   :  { %498 = vsyncadd [#allocation3], 4294967264 }
 0x2cc   :  { %449 = vsyncpa [#allocation3], 1 }

</bundles_post_ra>
